<compile_context>
chip_gen: v7x
topology: tpu7x:2x2x1
jax: 0.10.0
libtpu: 0.0.40
codegen_flags: <defaults>
</compile_context>

<pallas_src>
import jax
import jax.numpy as jnp
from jax.experimental import pallas as pl
from jax.experimental.pallas import tpu as pltpu

IN_DIM = 2
HID_DIM = 16
OUT_DIM = 3

_SUB = 8       # sublanes per batch tile
_LANE = 128    # lanes per batch tile
_TILE = _SUB * _LANE   # 1024 samples per grid step (raise _SUB for huge batches)


def _boxnet_kernel(w1_ref, b1_ref, w2_ref, b2_ref, x_ref, o_ref):
    # w1_ref: SMEM (IN_DIM*HID_DIM,)  f32, flat row-major: w1[i*HID_DIM + j] = W1^T[i, j]
    # b1_ref: SMEM (HID_DIM,)         f32
    # w2_ref: SMEM (OUT_DIM*HID_DIM,) f32, flat row-major: w2[o*HID_DIM + j] = W2[o, j]
    # b2_ref: SMEM (OUT_DIM,)         f32
    # x_ref : VMEM (IN_DIM, 8, 128)   f32, batch on (sublane, lane)
    # o_ref : VMEM (OUT_DIM, 8, 128)  f32
    x0 = x_ref[0]                      # (8, 128) — one full vreg, 1024 samples
    x1 = x_ref[1]

    # Logit accumulators start at the (zero) output biases.
    l0 = jnp.zeros_like(x0) + b2_ref[0]
    l1 = jnp.zeros_like(x0) + b2_ref[1]
    l2 = jnp.zeros_like(x0) + b2_ref[2]

    # Fused Linear(2,16)+ReLU+Linear(16,3): one hidden unit at a time, all
    # scalar(SMEM) * vector(vreg) FMAs on the VPU — no MXU, no XLU reductions.
    for j in range(HID_DIM):           # static unroll (16)
        h = jnp.maximum(w1_ref[j] * x0 + w1_ref[HID_DIM + j] * x1 + b1_ref[j], 0.0)
        l0 = l0 + w2_ref[j] * h
        l1 = l1 + w2_ref[HID_DIM + j] * h
        l2 = l2 + w2_ref[2 * HID_DIM + j] * h

    # Per-sample softmax over the 3 classes, fully elementwise per lane.
    m = jnp.maximum(jnp.maximum(l0, l1), l2)
    e0 = jnp.exp(l0 - m)
    e1 = jnp.exp(l1 - m)
    e2 = jnp.exp(l2 - m)
    inv = pl.reciprocal(e0 + e1 + e2, approx=False)   # exact: probs sum to 1
    # Three full-tile (unmasked) stores — one per class row.
    o_ref[0] = e0 * inv
    o_ref[1] = e1 * inv
    o_ref[2] = e2 * inv


def boxnet_force_forward(x, w1_io, b1, w2_oi, b2):
    """Forward pass.

    x:      (2,) float32 (module's 1-D contract) or (B, 2) batched states
    w1_io:  (2, 16)  == torch Linear(2,16).weight.T
    b1:     (16,)
    w2_oi:  (3, 16)  == torch Linear(16,3).weight
    b2:     (3,)
    Returns softmax probabilities, shape (3,) or (B, 3).
    """
    x = jnp.asarray(x, jnp.float32)

    if x.ndim == 1:
        # B == 1: a 2->16->3 MLP cannot amortize a custom-call + DMA setup;
        # plain XLA-fused jnp is strictly faster on every TPU generation.
        h = jnp.maximum(x @ w1_io + b1, 0.0)
        logits = h @ w2_oi.T + b2
        return jax.nn.softmax(logits, axis=0)

    b = x.shape[0]
    n_tiles = pl.cdiv(b, _TILE)
    pad_b = n_tiles * _TILE
    n_rows = pad_b // _LANE

    # Lane-major layout: sample index = row * 128 + lane.  Padded samples are
    # zero -> uniform 1/3 probs, sliced off below.
    xt = jnp.pad(x.T, ((0, 0), (0, pad_b - b)))              # (IN_DIM, pad_b)
    x_lm = xt.reshape(IN_DIM, n_rows, _LANE)                 # (IN_DIM, rows, 128)

    out_lm = pl.pallas_call(
        _boxnet_kernel,
        out_shape=jax.ShapeDtypeStruct((OUT_DIM, n_rows, _LANE), jnp.float32),
        grid=(n_tiles,),
        in_specs=[
            pl.BlockSpec(memory_space=pltpu.MemorySpace.SMEM),   # w1 flat (32,)
            pl.BlockSpec(memory_space=pltpu.MemorySpace.SMEM),   # b1      (16,)
            pl.BlockSpec(memory_space=pltpu.MemorySpace.SMEM),   # w2 flat (48,)
            pl.BlockSpec(memory_space=pltpu.MemorySpace.SMEM),   # b2      (3,)
            pl.BlockSpec((IN_DIM, _SUB, _LANE), lambda t: (0, t, 0)),
        ],
        out_specs=pl.BlockSpec((OUT_DIM, _SUB, _LANE), lambda t: (0, t, 0)),
        compiler_params=pltpu.CompilerParams(
            dimension_semantics=("parallel",)),      # v7x: shard tiles over 2 TCs
    )(w1_io.reshape(-1), b1, w2_oi.reshape(-1), b2, x_lm)

    return out_lm.reshape(OUT_DIM, pad_b)[:, :b].T            # (B, 3)


def init_params(key):
    """nn.Linear default weight init; biases zeroed exactly as in __init__."""
    k1, k2 = jax.random.split(key)
    lim1 = 1.0 / jnp.sqrt(jnp.float32(IN_DIM))
    lim2 = 1.0 / jnp.sqrt(jnp.float32(HID_DIM))
    w1_io = jax.random.uniform(k1, (IN_DIM, HID_DIM), jnp.float32, -lim1, lim1)
    w2_oi = jax.random.uniform(k2, (OUT_DIM, HID_DIM), jnp.float32, -lim2, lim2)
    b1 = jnp.zeros((HID_DIM,), jnp.float32)
    b2 = jnp.zeros((OUT_DIM,), jnp.float32)
    return w1_io, b1, w2_oi, b2


def reference_forward(x, w1_io, b1, w2_oi, b2):
    h = jnp.maximum(x @ w1_io + b1, 0.0)
    logits = h @ w2_oi.T + b2
    return jax.nn.softmax(logits, axis=0)


if __name__ == "__main__":
    key = jax.random.PRNGKey(0)
    kx, kb, kp = jax.random.split(key, 3)
    params = init_params(kp)

    # --- Module's 1-D contract (B == 1): jnp fast path, no custom call. -----
    x1 = jax.random.normal(kx, (IN_DIM,), jnp.float32)
    p1 = jax.block_until_ready(boxnet_force_forward(x1, *params))
    r1 = reference_forward(x1, *params)
    assert p1.shape == (OUT_DIM,)
    assert jnp.allclose(jnp.sum(p1), 1.0, atol=1e-5)
    assert jnp.allclose(p1, r1, atol=1e-5, rtol=1e-5), (p1, r1)

    # --- Batched path through the Pallas kernel (single grid step). ---------
    B = 200   # deliberately not a multiple of the 1024-sample tile
    xb = jax.random.normal(kb, (B, IN_DIM), jnp.float32)
    pb = jax.block_until_ready(boxnet_force_forward(xb, *params))
    rb = jax.vmap(lambda v: reference_forward(v, *params))(xb)
    assert pb.shape == (B, OUT_DIM)
    assert jnp.allclose(jnp.sum(pb, axis=-1), 1.0, atol=1e-5)
    assert jnp.allclose(pb, rb, atol=1e-5, rtol=1e-5), (pb, rb)

    # --- Larger batch: exercises multiple grid steps on the parallel axis. --
    B2 = 2185
    xb2 = jax.random.normal(jax.random.fold_in(kb, 1), (B2, IN_DIM), jnp.float32)
    pb2 = jax.block_until_ready(boxnet_force_forward(xb2, *params))
    rb2 = jax.vmap(lambda v: reference_forward(v, *params))(xb2)
    assert pb2.shape == (B2, OUT_DIM)
    assert jnp.allclose(jnp.sum(pb2, axis=-1), 1.0, atol=1e-5)
    assert jnp.allclose(pb2, rb2, atol=1e-5, rtol=1e-5)

    print("KERNEL_OK")
</pallas_src>

<mosaic_0001>
module attributes {stable_mosaic.version = 11 : i64} {
  func.func @_boxnet_kernel(%arg0: i32, %arg1: memref<32xf32, #tpu.memory_space<smem>>, %arg2: memref<16xf32, #tpu.memory_space<smem>>, %arg3: memref<48xf32, #tpu.memory_space<smem>>, %arg4: memref<3xf32, #tpu.memory_space<smem>>, %arg5: memref<2x8x128xf32, #tpu.memory_space<vmem>>, %arg6: memref<3x8x128xf32, #tpu.memory_space<vmem>>) attributes {dimension_semantics = [#tpu.dimension_semantics<parallel>], iteration_bounds = array<i64: 1>, scalar_prefetch = 0 : i64, scratch_operands = 0 : i64, tpu.core_type = #tpu.core_type<tc>, window_params = [{transform_indices = @transform_0, window_bounds = array<i64: 32>}, {transform_indices = @transform_1, window_bounds = array<i64: 16>}, {transform_indices = @transform_2, window_bounds = array<i64: 48>}, {transform_indices = @transform_3, window_bounds = array<i64: 3>}, {transform_indices = @transform_4, window_bounds = array<i64: 2, 8, 128>}, {transform_indices = @transform_5, window_bounds = array<i64: 3, 8, 128>}]} {
    %c0 = arith.constant 0 : index
    %c0_0 = arith.constant 0 : index
    %c0_1 = arith.constant 0 : index
    %0 = vector.load %arg5[%c0, %c0_0, %c0_1] : memref<2x8x128xf32, #tpu.memory_space<vmem>>, vector<1x8x128xf32>
    %1 = vector.shape_cast %0 : vector<1x8x128xf32> to vector<8x128xf32>
    %c1 = arith.constant 1 : index
    %c0_2 = arith.constant 0 : index
    %c0_3 = arith.constant 0 : index
    %2 = vector.load %arg5[%c1, %c0_2, %c0_3] : memref<2x8x128xf32, #tpu.memory_space<vmem>>, vector<1x8x128xf32>
    %3 = vector.shape_cast %2 : vector<1x8x128xf32> to vector<8x128xf32>
    %cst = arith.constant 0.000000e+00 : f32
    %4 = vector.broadcast %cst : f32 to vector<8x128xf32>
    %c0_4 = arith.constant 0 : index
    %5 = memref.load %arg4[%c0_4] : memref<3xf32, #tpu.memory_space<smem>>
    %6 = vector.broadcast %5 : f32 to vector<8x128xf32>
    %7 = arith.addf %4, %6 : vector<8x128xf32>
    %cst_5 = arith.constant 0.000000e+00 : f32
    %8 = vector.broadcast %cst_5 : f32 to vector<8x128xf32>
    %c1_6 = arith.constant 1 : index
    %9 = memref.load %arg4[%c1_6] : memref<3xf32, #tpu.memory_space<smem>>
    %10 = vector.broadcast %9 : f32 to vector<8x128xf32>
    %11 = arith.addf %8, %10 : vector<8x128xf32>
    %cst_7 = arith.constant 0.000000e+00 : f32
    %12 = vector.broadcast %cst_7 : f32 to vector<8x128xf32>
    %c2 = arith.constant 2 : index
    %13 = memref.load %arg4[%c2] : memref<3xf32, #tpu.memory_space<smem>>
    %14 = vector.broadcast %13 : f32 to vector<8x128xf32>
    %15 = arith.addf %12, %14 : vector<8x128xf32>
    %c0_8 = arith.constant 0 : index
    %16 = memref.load %arg1[%c0_8] : memref<32xf32, #tpu.memory_space<smem>>
    %17 = vector.broadcast %16 : f32 to vector<8x128xf32>
    %18 = arith.mulf %17, %1 : vector<8x128xf32>
    %c16 = arith.constant 16 : index
    %19 = memref.load %arg1[%c16] : memref<32xf32, #tpu.memory_space<smem>>
    %20 = vector.broadcast %19 : f32 to vector<8x128xf32>
    %21 = arith.mulf %20, %3 : vector<8x128xf32>
    %22 = arith.addf %18, %21 : vector<8x128xf32>
    %c0_9 = arith.constant 0 : index
    %23 = memref.load %arg2[%c0_9] : memref<16xf32, #tpu.memory_space<smem>>
    %24 = vector.broadcast %23 : f32 to vector<8x128xf32>
    %25 = arith.addf %22, %24 : vector<8x128xf32>
    %cst_10 = arith.constant 0.000000e+00 : f32
    %26 = vector.broadcast %cst_10 : f32 to vector<8x128xf32>
    %27 = arith.maximumf %25, %26 : vector<8x128xf32>
    %c0_11 = arith.constant 0 : index
    %28 = memref.load %arg3[%c0_11] : memref<48xf32, #tpu.memory_space<smem>>
    %29 = vector.broadcast %28 : f32 to vector<8x128xf32>
    %30 = arith.mulf %29, %27 : vector<8x128xf32>
    %31 = arith.addf %7, %30 : vector<8x128xf32>
    %c16_12 = arith.constant 16 : index
    %32 = memref.load %arg3[%c16_12] : memref<48xf32, #tpu.memory_space<smem>>
    %33 = vector.broadcast %32 : f32 to vector<8x128xf32>
    %34 = arith.mulf %33, %27 : vector<8x128xf32>
    %35 = arith.addf %11, %34 : vector<8x128xf32>
    %c32 = arith.constant 32 : index
    %36 = memref.load %arg3[%c32] : memref<48xf32, #tpu.memory_space<smem>>
    %37 = vector.broadcast %36 : f32 to vector<8x128xf32>
    %38 = arith.mulf %37, %27 : vector<8x128xf32>
    %39 = arith.addf %15, %38 : vector<8x128xf32>
    %c1_13 = arith.constant 1 : index
    %40 = memref.load %arg1[%c1_13] : memref<32xf32, #tpu.memory_space<smem>>
    %41 = vector.broadcast %40 : f32 to vector<8x128xf32>
    %42 = arith.mulf %41, %1 : vector<8x128xf32>
    %c17 = arith.constant 17 : index
    %43 = memref.load %arg1[%c17] : memref<32xf32, #tpu.memory_space<smem>>
    %44 = vector.broadcast %43 : f32 to vector<8x128xf32>
    %45 = arith.mulf %44, %3 : vector<8x128xf32>
    %46 = arith.addf %42, %45 : vector<8x128xf32>
    %c1_14 = arith.constant 1 : index
    %47 = memref.load %arg2[%c1_14] : memref<16xf32, #tpu.memory_space<smem>>
    %48 = vector.broadcast %47 : f32 to vector<8x128xf32>
    %49 = arith.addf %46, %48 : vector<8x128xf32>
    %cst_15 = arith.constant 0.000000e+00 : f32
    %50 = vector.broadcast %cst_15 : f32 to vector<8x128xf32>
    %51 = arith.maximumf %49, %50 : vector<8x128xf32>
    %c1_16 = arith.constant 1 : index
    %52 = memref.load %arg3[%c1_16] : memref<48xf32, #tpu.memory_space<smem>>
    %53 = vector.broadcast %52 : f32 to vector<8x128xf32>
    %54 = arith.mulf %53, %51 : vector<8x128xf32>
    %55 = arith.addf %31, %54 : vector<8x128xf32>
    %c17_17 = arith.constant 17 : index
    %56 = memref.load %arg3[%c17_17] : memref<48xf32, #tpu.memory_space<smem>>
    %57 = vector.broadcast %56 : f32 to vector<8x128xf32>
    %58 = arith.mulf %57, %51 : vector<8x128xf32>
    %59 = arith.addf %35, %58 : vector<8x128xf32>
    %c33 = arith.constant 33 : index
    %60 = memref.load %arg3[%c33] : memref<48xf32, #tpu.memory_space<smem>>
    %61 = vector.broadcast %60 : f32 to vector<8x128xf32>
    %62 = arith.mulf %61, %51 : vector<8x128xf32>
    %63 = arith.addf %39, %62 : vector<8x128xf32>
    %c2_18 = arith.constant 2 : index
    %64 = memref.load %arg1[%c2_18] : memref<32xf32, #tpu.memory_space<smem>>
    %65 = vector.broadcast %64 : f32 to vector<8x128xf32>
    %66 = arith.mulf %65, %1 : vector<8x128xf32>
    %c18 = arith.constant 18 : index
    %67 = memref.load %arg1[%c18] : memref<32xf32, #tpu.memory_space<smem>>
    %68 = vector.broadcast %67 : f32 to vector<8x128xf32>
    %69 = arith.mulf %68, %3 : vector<8x128xf32>
    %70 = arith.addf %66, %69 : vector<8x128xf32>
    %c2_19 = arith.constant 2 : index
    %71 = memref.load %arg2[%c2_19] : memref<16xf32, #tpu.memory_space<smem>>
    %72 = vector.broadcast %71 : f32 to vector<8x128xf32>
    %73 = arith.addf %70, %72 : vector<8x128xf32>
    %cst_20 = arith.constant 0.000000e+00 : f32
    %74 = vector.broadcast %cst_20 : f32 to vector<8x128xf32>
    %75 = arith.maximumf %73, %74 : vector<8x128xf32>
    %c2_21 = arith.constant 2 : index
    %76 = memref.load %arg3[%c2_21] : memref<48xf32, #tpu.memory_space<smem>>
    %77 = vector.broadcast %76 : f32 to vector<8x128xf32>
    %78 = arith.mulf %77, %75 : vector<8x128xf32>
    %79 = arith.addf %55, %78 : vector<8x128xf32>
    %c18_22 = arith.constant 18 : index
    %80 = memref.load %arg3[%c18_22] : memref<48xf32, #tpu.memory_space<smem>>
    %81 = vector.broadcast %80 : f32 to vector<8x128xf32>
    %82 = arith.mulf %81, %75 : vector<8x128xf32>
    %83 = arith.addf %59, %82 : vector<8x128xf32>
    %c34 = arith.constant 34 : index
    %84 = memref.load %arg3[%c34] : memref<48xf32, #tpu.memory_space<smem>>
    %85 = vector.broadcast %84 : f32 to vector<8x128xf32>
    %86 = arith.mulf %85, %75 : vector<8x128xf32>
    %87 = arith.addf %63, %86 : vector<8x128xf32>
    %c3 = arith.constant 3 : index
    %88 = memref.load %arg1[%c3] : memref<32xf32, #tpu.memory_space<smem>>
    %89 = vector.broadcast %88 : f32 to vector<8x128xf32>
    %90 = arith.mulf %89, %1 : vector<8x128xf32>
    %c19 = arith.constant 19 : index
    %91 = memref.load %arg1[%c19] : memref<32xf32, #tpu.memory_space<smem>>
    %92 = vector.broadcast %91 : f32 to vector<8x128xf32>
    %93 = arith.mulf %92, %3 : vector<8x128xf32>
    %94 = arith.addf %90, %93 : vector<8x128xf32>
    %c3_23 = arith.constant 3 : index
    %95 = memref.load %arg2[%c3_23] : memref<16xf32, #tpu.memory_space<smem>>
    %96 = vector.broadcast %95 : f32 to vector<8x128xf32>
    %97 = arith.addf %94, %96 : vector<8x128xf32>
    %cst_24 = arith.constant 0.000000e+00 : f32
    %98 = vector.broadcast %cst_24 : f32 to vector<8x128xf32>
    %99 = arith.maximumf %97, %98 : vector<8x128xf32>
    %c3_25 = arith.constant 3 : index
    %100 = memref.load %arg3[%c3_25] : memref<48xf32, #tpu.memory_space<smem>>
    %101 = vector.broadcast %100 : f32 to vector<8x128xf32>
    %102 = arith.mulf %101, %99 : vector<8x128xf32>
    %103 = arith.addf %79, %102 : vector<8x128xf32>
    %c19_26 = arith.constant 19 : index
    %104 = memref.load %arg3[%c19_26] : memref<48xf32, #tpu.memory_space<smem>>
    %105 = vector.broadcast %104 : f32 to vector<8x128xf32>
    %106 = arith.mulf %105, %99 : vector<8x128xf32>
    %107 = arith.addf %83, %106 : vector<8x128xf32>
    %c35 = arith.constant 35 : index
    %108 = memref.load %arg3[%c35] : memref<48xf32, #tpu.memory_space<smem>>
    %109 = vector.broadcast %108 : f32 to vector<8x128xf32>
    %110 = arith.mulf %109, %99 : vector<8x128xf32>
    %111 = arith.addf %87, %110 : vector<8x128xf32>
    %c4 = arith.constant 4 : index
    %112 = memref.load %arg1[%c4] : memref<32xf32, #tpu.memory_space<smem>>
    %113 = vector.broadcast %112 : f32 to vector<8x128xf32>
    %114 = arith.mulf %113, %1 : vector<8x128xf32>
    %c20 = arith.constant 20 : index
    %115 = memref.load %arg1[%c20] : memref<32xf32, #tpu.memory_space<smem>>
    %116 = vector.broadcast %115 : f32 to vector<8x128xf32>
    %117 = arith.mulf %116, %3 : vector<8x128xf32>
    %118 = arith.addf %114, %117 : vector<8x128xf32>
    %c4_27 = arith.constant 4 : index
    %119 = memref.load %arg2[%c4_27] : memref<16xf32, #tpu.memory_space<smem>>
    %120 = vector.broadcast %119 : f32 to vector<8x128xf32>
    %121 = arith.addf %118, %120 : vector<8x128xf32>
    %cst_28 = arith.constant 0.000000e+00 : f32
    %122 = vector.broadcast %cst_28 : f32 to vector<8x128xf32>
    %123 = arith.maximumf %121, %122 : vector<8x128xf32>
    %c4_29 = arith.constant 4 : index
    %124 = memref.load %arg3[%c4_29] : memref<48xf32, #tpu.memory_space<smem>>
    %125 = vector.broadcast %124 : f32 to vector<8x128xf32>
    %126 = arith.mulf %125, %123 : vector<8x128xf32>
    %127 = arith.addf %103, %126 : vector<8x128xf32>
    %c20_30 = arith.constant 20 : index
    %128 = memref.load %arg3[%c20_30] : memref<48xf32, #tpu.memory_space<smem>>
    %129 = vector.broadcast %128 : f32 to vector<8x128xf32>
    %130 = arith.mulf %129, %123 : vector<8x128xf32>
    %131 = arith.addf %107, %130 : vector<8x128xf32>
    %c36 = arith.constant 36 : index
    %132 = memref.load %arg3[%c36] : memref<48xf32, #tpu.memory_space<smem>>
    %133 = vector.broadcast %132 : f32 to vector<8x128xf32>
    %134 = arith.mulf %133, %123 : vector<8x128xf32>
    %135 = arith.addf %111, %134 : vector<8x128xf32>
    %c5 = arith.constant 5 : index
    %136 = memref.load %arg1[%c5] : memref<32xf32, #tpu.memory_space<smem>>
    %137 = vector.broadcast %136 : f32 to vector<8x128xf32>
    %138 = arith.mulf %137, %1 : vector<8x128xf32>
    %c21 = arith.constant 21 : index
    %139 = memref.load %arg1[%c21] : memref<32xf32, #tpu.memory_space<smem>>
    %140 = vector.broadcast %139 : f32 to vector<8x128xf32>
    %141 = arith.mulf %140, %3 : vector<8x128xf32>
    %142 = arith.addf %138, %141 : vector<8x128xf32>
    %c5_31 = arith.constant 5 : index
    %143 = memref.load %arg2[%c5_31] : memref<16xf32, #tpu.memory_space<smem>>
    %144 = vector.broadcast %143 : f32 to vector<8x128xf32>
    %145 = arith.addf %142, %144 : vector<8x128xf32>
    %cst_32 = arith.constant 0.000000e+00 : f32
    %146 = vector.broadcast %cst_32 : f32 to vector<8x128xf32>
    %147 = arith.maximumf %145, %146 : vector<8x128xf32>
    %c5_33 = arith.constant 5 : index
    %148 = memref.load %arg3[%c5_33] : memref<48xf32, #tpu.memory_space<smem>>
    %149 = vector.broadcast %148 : f32 to vector<8x128xf32>
    %150 = arith.mulf %149, %147 : vector<8x128xf32>
    %151 = arith.addf %127, %150 : vector<8x128xf32>
    %c21_34 = arith.constant 21 : index
    %152 = memref.load %arg3[%c21_34] : memref<48xf32, #tpu.memory_space<smem>>
    %153 = vector.broadcast %152 : f32 to vector<8x128xf32>
    %154 = arith.mulf %153, %147 : vector<8x128xf32>
    %155 = arith.addf %131, %154 : vector<8x128xf32>
    %c37 = arith.constant 37 : index
    %156 = memref.load %arg3[%c37] : memref<48xf32, #tpu.memory_space<smem>>
    %157 = vector.broadcast %156 : f32 to vector<8x128xf32>
    %158 = arith.mulf %157, %147 : vector<8x128xf32>
    %159 = arith.addf %135, %158 : vector<8x128xf32>
    %c6 = arith.constant 6 : index
    %160 = memref.load %arg1[%c6] : memref<32xf32, #tpu.memory_space<smem>>
    %161 = vector.broadcast %160 : f32 to vector<8x128xf32>
    %162 = arith.mulf %161, %1 : vector<8x128xf32>
    %c22 = arith.constant 22 : index
    %163 = memref.load %arg1[%c22] : memref<32xf32, #tpu.memory_space<smem>>
    %164 = vector.broadcast %163 : f32 to vector<8x128xf32>
    %165 = arith.mulf %164, %3 : vector<8x128xf32>
    %166 = arith.addf %162, %165 : vector<8x128xf32>
    %c6_35 = arith.constant 6 : index
    %167 = memref.load %arg2[%c6_35] : memref<16xf32, #tpu.memory_space<smem>>
    %168 = vector.broadcast %167 : f32 to vector<8x128xf32>
    %169 = arith.addf %166, %168 : vector<8x128xf32>
    %cst_36 = arith.constant 0.000000e+00 : f32
    %170 = vector.broadcast %cst_36 : f32 to vector<8x128xf32>
    %171 = arith.maximumf %169, %170 : vector<8x128xf32>
    %c6_37 = arith.constant 6 : index
    %172 = memref.load %arg3[%c6_37] : memref<48xf32, #tpu.memory_space<smem>>
    %173 = vector.broadcast %172 : f32 to vector<8x128xf32>
    %174 = arith.mulf %173, %171 : vector<8x128xf32>
    %175 = arith.addf %151, %174 : vector<8x128xf32>
    %c22_38 = arith.constant 22 : index
    %176 = memref.load %arg3[%c22_38] : memref<48xf32, #tpu.memory_space<smem>>
    %177 = vector.broadcast %176 : f32 to vector<8x128xf32>
    %178 = arith.mulf %177, %171 : vector<8x128xf32>
    %179 = arith.addf %155, %178 : vector<8x128xf32>
    %c38 = arith.constant 38 : index
    %180 = memref.load %arg3[%c38] : memref<48xf32, #tpu.memory_space<smem>>
    %181 = vector.broadcast %180 : f32 to vector<8x128xf32>
    %182 = arith.mulf %181, %171 : vector<8x128xf32>
    %183 = arith.addf %159, %182 : vector<8x128xf32>
    %c7 = arith.constant 7 : index
    %184 = memref.load %arg1[%c7] : memref<32xf32, #tpu.memory_space<smem>>
    %185 = vector.broadcast %184 : f32 to vector<8x128xf32>
    %186 = arith.mulf %185, %1 : vector<8x128xf32>
    %c23 = arith.constant 23 : index
    %187 = memref.load %arg1[%c23] : memref<32xf32, #tpu.memory_space<smem>>
    %188 = vector.broadcast %187 : f32 to vector<8x128xf32>
    %189 = arith.mulf %188, %3 : vector<8x128xf32>
    %190 = arith.addf %186, %189 : vector<8x128xf32>
    %c7_39 = arith.constant 7 : index
    %191 = memref.load %arg2[%c7_39] : memref<16xf32, #tpu.memory_space<smem>>
    %192 = vector.broadcast %191 : f32 to vector<8x128xf32>
    %193 = arith.addf %190, %192 : vector<8x128xf32>
    %cst_40 = arith.constant 0.000000e+00 : f32
    %194 = vector.broadcast %cst_40 : f32 to vector<8x128xf32>
    %195 = arith.maximumf %193, %194 : vector<8x128xf32>
    %c7_41 = arith.constant 7 : index
    %196 = memref.load %arg3[%c7_41] : memref<48xf32, #tpu.memory_space<smem>>
    %197 = vector.broadcast %196 : f32 to vector<8x128xf32>
    %198 = arith.mulf %197, %195 : vector<8x128xf32>
    %199 = arith.addf %175, %198 : vector<8x128xf32>
    %c23_42 = arith.constant 23 : index
    %200 = memref.load %arg3[%c23_42] : memref<48xf32, #tpu.memory_space<smem>>
    %201 = vector.broadcast %200 : f32 to vector<8x128xf32>
    %202 = arith.mulf %201, %195 : vector<8x128xf32>
    %203 = arith.addf %179, %202 : vector<8x128xf32>
    %c39 = arith.constant 39 : index
    %204 = memref.load %arg3[%c39] : memref<48xf32, #tpu.memory_space<smem>>
    %205 = vector.broadcast %204 : f32 to vector<8x128xf32>
    %206 = arith.mulf %205, %195 : vector<8x128xf32>
    %207 = arith.addf %183, %206 : vector<8x128xf32>
    %c8 = arith.constant 8 : index
    %208 = memref.load %arg1[%c8] : memref<32xf32, #tpu.memory_space<smem>>
    %209 = vector.broadcast %208 : f32 to vector<8x128xf32>
    %210 = arith.mulf %209, %1 : vector<8x128xf32>
    %c24 = arith.constant 24 : index
    %211 = memref.load %arg1[%c24] : memref<32xf32, #tpu.memory_space<smem>>
    %212 = vector.broadcast %211 : f32 to vector<8x128xf32>
    %213 = arith.mulf %212, %3 : vector<8x128xf32>
    %214 = arith.addf %210, %213 : vector<8x128xf32>
    %c8_43 = arith.constant 8 : index
    %215 = memref.load %arg2[%c8_43] : memref<16xf32, #tpu.memory_space<smem>>
    %216 = vector.broadcast %215 : f32 to vector<8x128xf32>
    %217 = arith.addf %214, %216 : vector<8x128xf32>
    %cst_44 = arith.constant 0.000000e+00 : f32
    %218 = vector.broadcast %cst_44 : f32 to vector<8x128xf32>
    %219 = arith.maximumf %217, %218 : vector<8x128xf32>
    %c8_45 = arith.constant 8 : index
    %220 = memref.load %arg3[%c8_45] : memref<48xf32, #tpu.memory_space<smem>>
    %221 = vector.broadcast %220 : f32 to vector<8x128xf32>
    %222 = arith.mulf %221, %219 : vector<8x128xf32>
    %223 = arith.addf %199, %222 : vector<8x128xf32>
    %c24_46 = arith.constant 24 : index
    %224 = memref.load %arg3[%c24_46] : memref<48xf32, #tpu.memory_space<smem>>
    %225 = vector.broadcast %224 : f32 to vector<8x128xf32>
    %226 = arith.mulf %225, %219 : vector<8x128xf32>
    %227 = arith.addf %203, %226 : vector<8x128xf32>
    %c40 = arith.constant 40 : index
    %228 = memref.load %arg3[%c40] : memref<48xf32, #tpu.memory_space<smem>>
    %229 = vector.broadcast %228 : f32 to vector<8x128xf32>
    %230 = arith.mulf %229, %219 : vector<8x128xf32>
    %231 = arith.addf %207, %230 : vector<8x128xf32>
    %c9 = arith.constant 9 : index
    %232 = memref.load %arg1[%c9] : memref<32xf32, #tpu.memory_space<smem>>
    %233 = vector.broadcast %232 : f32 to vector<8x128xf32>
    %234 = arith.mulf %233, %1 : vector<8x128xf32>
    %c25 = arith.constant 25 : index
    %235 = memref.load %arg1[%c25] : memref<32xf32, #tpu.memory_space<smem>>
    %236 = vector.broadcast %235 : f32 to vector<8x128xf32>
    %237 = arith.mulf %236, %3 : vector<8x128xf32>
    %238 = arith.addf %234, %237 : vector<8x128xf32>
    %c9_47 = arith.constant 9 : index
    %239 = memref.load %arg2[%c9_47] : memref<16xf32, #tpu.memory_space<smem>>
    %240 = vector.broadcast %239 : f32 to vector<8x128xf32>
    %241 = arith.addf %238, %240 : vector<8x128xf32>
    %cst_48 = arith.constant 0.000000e+00 : f32
    %242 = vector.broadcast %cst_48 : f32 to vector<8x128xf32>
    %243 = arith.maximumf %241, %242 : vector<8x128xf32>
    %c9_49 = arith.constant 9 : index
    %244 = memref.load %arg3[%c9_49] : memref<48xf32, #tpu.memory_space<smem>>
    %245 = vector.broadcast %244 : f32 to vector<8x128xf32>
    %246 = arith.mulf %245, %243 : vector<8x128xf32>
    %247 = arith.addf %223, %246 : vector<8x128xf32>
    %c25_50 = arith.constant 25 : index
    %248 = memref.load %arg3[%c25_50] : memref<48xf32, #tpu.memory_space<smem>>
    %249 = vector.broadcast %248 : f32 to vector<8x128xf32>
    %250 = arith.mulf %249, %243 : vector<8x128xf32>
    %251 = arith.addf %227, %250 : vector<8x128xf32>
    %c41 = arith.constant 41 : index
    %252 = memref.load %arg3[%c41] : memref<48xf32, #tpu.memory_space<smem>>
    %253 = vector.broadcast %252 : f32 to vector<8x128xf32>
    %254 = arith.mulf %253, %243 : vector<8x128xf32>
    %255 = arith.addf %231, %254 : vector<8x128xf32>
    %c10 = arith.constant 10 : index
    %256 = memref.load %arg1[%c10] : memref<32xf32, #tpu.memory_space<smem>>
    %257 = vector.broadcast %256 : f32 to vector<8x128xf32>
    %258 = arith.mulf %257, %1 : vector<8x128xf32>
    %c26 = arith.constant 26 : index
    %259 = memref.load %arg1[%c26] : memref<32xf32, #tpu.memory_space<smem>>
    %260 = vector.broadcast %259 : f32 to vector<8x128xf32>
    %261 = arith.mulf %260, %3 : vector<8x128xf32>
    %262 = arith.addf %258, %261 : vector<8x128xf32>
    %c10_51 = arith.constant 10 : index
    %263 = memref.load %arg2[%c10_51] : memref<16xf32, #tpu.memory_space<smem>>
    %264 = vector.broadcast %263 : f32 to vector<8x128xf32>
    %265 = arith.addf %262, %264 : vector<8x128xf32>
    %cst_52 = arith.constant 0.000000e+00 : f32
    %266 = vector.broadcast %cst_52 : f32 to vector<8x128xf32>
    %267 = arith.maximumf %265, %266 : vector<8x128xf32>
    %c10_53 = arith.constant 10 : index
    %268 = memref.load %arg3[%c10_53] : memref<48xf32, #tpu.memory_space<smem>>
    %269 = vector.broadcast %268 : f32 to vector<8x128xf32>
    %270 = arith.mulf %269, %267 : vector<8x128xf32>
    %271 = arith.addf %247, %270 : vector<8x128xf32>
    %c26_54 = arith.constant 26 : index
    %272 = memref.load %arg3[%c26_54] : memref<48xf32, #tpu.memory_space<smem>>
    %273 = vector.broadcast %272 : f32 to vector<8x128xf32>
    %274 = arith.mulf %273, %267 : vector<8x128xf32>
    %275 = arith.addf %251, %274 : vector<8x128xf32>
    %c42 = arith.constant 42 : index
    %276 = memref.load %arg3[%c42] : memref<48xf32, #tpu.memory_space<smem>>
    %277 = vector.broadcast %276 : f32 to vector<8x128xf32>
    %278 = arith.mulf %277, %267 : vector<8x128xf32>
    %279 = arith.addf %255, %278 : vector<8x128xf32>
    %c11 = arith.constant 11 : index
    %280 = memref.load %arg1[%c11] : memref<32xf32, #tpu.memory_space<smem>>
    %281 = vector.broadcast %280 : f32 to vector<8x128xf32>
    %282 = arith.mulf %281, %1 : vector<8x128xf32>
    %c27 = arith.constant 27 : index
    %283 = memref.load %arg1[%c27] : memref<32xf32, #tpu.memory_space<smem>>
    %284 = vector.broadcast %283 : f32 to vector<8x128xf32>
    %285 = arith.mulf %284, %3 : vector<8x128xf32>
    %286 = arith.addf %282, %285 : vector<8x128xf32>
    %c11_55 = arith.constant 11 : index
    %287 = memref.load %arg2[%c11_55] : memref<16xf32, #tpu.memory_space<smem>>
    %288 = vector.broadcast %287 : f32 to vector<8x128xf32>
    %289 = arith.addf %286, %288 : vector<8x128xf32>
    %cst_56 = arith.constant 0.000000e+00 : f32
    %290 = vector.broadcast %cst_56 : f32 to vector<8x128xf32>
    %291 = arith.maximumf %289, %290 : vector<8x128xf32>
    %c11_57 = arith.constant 11 : index
    %292 = memref.load %arg3[%c11_57] : memref<48xf32, #tpu.memory_space<smem>>
    %293 = vector.broadcast %292 : f32 to vector<8x128xf32>
    %294 = arith.mulf %293, %291 : vector<8x128xf32>
    %295 = arith.addf %271, %294 : vector<8x128xf32>
    %c27_58 = arith.constant 27 : index
    %296 = memref.load %arg3[%c27_58] : memref<48xf32, #tpu.memory_space<smem>>
    %297 = vector.broadcast %296 : f32 to vector<8x128xf32>
    %298 = arith.mulf %297, %291 : vector<8x128xf32>
    %299 = arith.addf %275, %298 : vector<8x128xf32>
    %c43 = arith.constant 43 : index
    %300 = memref.load %arg3[%c43] : memref<48xf32, #tpu.memory_space<smem>>
    %301 = vector.broadcast %300 : f32 to vector<8x128xf32>
    %302 = arith.mulf %301, %291 : vector<8x128xf32>
    %303 = arith.addf %279, %302 : vector<8x128xf32>
    %c12 = arith.constant 12 : index
    %304 = memref.load %arg1[%c12] : memref<32xf32, #tpu.memory_space<smem>>
    %305 = vector.broadcast %304 : f32 to vector<8x128xf32>
    %306 = arith.mulf %305, %1 : vector<8x128xf32>
    %c28 = arith.constant 28 : index
    %307 = memref.load %arg1[%c28] : memref<32xf32, #tpu.memory_space<smem>>
    %308 = vector.broadcast %307 : f32 to vector<8x128xf32>
    %309 = arith.mulf %308, %3 : vector<8x128xf32>
    %310 = arith.addf %306, %309 : vector<8x128xf32>
    %c12_59 = arith.constant 12 : index
    %311 = memref.load %arg2[%c12_59] : memref<16xf32, #tpu.memory_space<smem>>
    %312 = vector.broadcast %311 : f32 to vector<8x128xf32>
    %313 = arith.addf %310, %312 : vector<8x128xf32>
    %cst_60 = arith.constant 0.000000e+00 : f32
    %314 = vector.broadcast %cst_60 : f32 to vector<8x128xf32>
    %315 = arith.maximumf %313, %314 : vector<8x128xf32>
    %c12_61 = arith.constant 12 : index
    %316 = memref.load %arg3[%c12_61] : memref<48xf32, #tpu.memory_space<smem>>
    %317 = vector.broadcast %316 : f32 to vector<8x128xf32>
    %318 = arith.mulf %317, %315 : vector<8x128xf32>
    %319 = arith.addf %295, %318 : vector<8x128xf32>
    %c28_62 = arith.constant 28 : index
    %320 = memref.load %arg3[%c28_62] : memref<48xf32, #tpu.memory_space<smem>>
    %321 = vector.broadcast %320 : f32 to vector<8x128xf32>
    %322 = arith.mulf %321, %315 : vector<8x128xf32>
    %323 = arith.addf %299, %322 : vector<8x128xf32>
    %c44 = arith.constant 44 : index
    %324 = memref.load %arg3[%c44] : memref<48xf32, #tpu.memory_space<smem>>
    %325 = vector.broadcast %324 : f32 to vector<8x128xf32>
    %326 = arith.mulf %325, %315 : vector<8x128xf32>
    %327 = arith.addf %303, %326 : vector<8x128xf32>
    %c13 = arith.constant 13 : index
    %328 = memref.load %arg1[%c13] : memref<32xf32, #tpu.memory_space<smem>>
    %329 = vector.broadcast %328 : f32 to vector<8x128xf32>
    %330 = arith.mulf %329, %1 : vector<8x128xf32>
    %c29 = arith.constant 29 : index
    %331 = memref.load %arg1[%c29] : memref<32xf32, #tpu.memory_space<smem>>
    %332 = vector.broadcast %331 : f32 to vector<8x128xf32>
    %333 = arith.mulf %332, %3 : vector<8x128xf32>
    %334 = arith.addf %330, %333 : vector<8x128xf32>
    %c13_63 = arith.constant 13 : index
    %335 = memref.load %arg2[%c13_63] : memref<16xf32, #tpu.memory_space<smem>>
    %336 = vector.broadcast %335 : f32 to vector<8x128xf32>
    %337 = arith.addf %334, %336 : vector<8x128xf32>
    %cst_64 = arith.constant 0.000000e+00 : f32
    %338 = vector.broadcast %cst_64 : f32 to vector<8x128xf32>
    %339 = arith.maximumf %337, %338 : vector<8x128xf32>
    %c13_65 = arith.constant 13 : index
    %340 = memref.load %arg3[%c13_65] : memref<48xf32, #tpu.memory_space<smem>>
    %341 = vector.broadcast %340 : f32 to vector<8x128xf32>
    %342 = arith.mulf %341, %339 : vector<8x128xf32>
    %343 = arith.addf %319, %342 : vector<8x128xf32>
    %c29_66 = arith.constant 29 : index
    %344 = memref.load %arg3[%c29_66] : memref<48xf32, #tpu.memory_space<smem>>
    %345 = vector.broadcast %344 : f32 to vector<8x128xf32>
    %346 = arith.mulf %345, %339 : vector<8x128xf32>
    %347 = arith.addf %323, %346 : vector<8x128xf32>
    %c45 = arith.constant 45 : index
    %348 = memref.load %arg3[%c45] : memref<48xf32, #tpu.memory_space<smem>>
    %349 = vector.broadcast %348 : f32 to vector<8x128xf32>
    %350 = arith.mulf %349, %339 : vector<8x128xf32>
    %351 = arith.addf %327, %350 : vector<8x128xf32>
    %c14 = arith.constant 14 : index
    %352 = memref.load %arg1[%c14] : memref<32xf32, #tpu.memory_space<smem>>
    %353 = vector.broadcast %352 : f32 to vector<8x128xf32>
    %354 = arith.mulf %353, %1 : vector<8x128xf32>
    %c30 = arith.constant 30 : index
    %355 = memref.load %arg1[%c30] : memref<32xf32, #tpu.memory_space<smem>>
    %356 = vector.broadcast %355 : f32 to vector<8x128xf32>
    %357 = arith.mulf %356, %3 : vector<8x128xf32>
    %358 = arith.addf %354, %357 : vector<8x128xf32>
    %c14_67 = arith.constant 14 : index
    %359 = memref.load %arg2[%c14_67] : memref<16xf32, #tpu.memory_space<smem>>
    %360 = vector.broadcast %359 : f32 to vector<8x128xf32>
    %361 = arith.addf %358, %360 : vector<8x128xf32>
    %cst_68 = arith.constant 0.000000e+00 : f32
    %362 = vector.broadcast %cst_68 : f32 to vector<8x128xf32>
    %363 = arith.maximumf %361, %362 : vector<8x128xf32>
    %c14_69 = arith.constant 14 : index
    %364 = memref.load %arg3[%c14_69] : memref<48xf32, #tpu.memory_space<smem>>
    %365 = vector.broadcast %364 : f32 to vector<8x128xf32>
    %366 = arith.mulf %365, %363 : vector<8x128xf32>
    %367 = arith.addf %343, %366 : vector<8x128xf32>
    %c30_70 = arith.constant 30 : index
    %368 = memref.load %arg3[%c30_70] : memref<48xf32, #tpu.memory_space<smem>>
    %369 = vector.broadcast %368 : f32 to vector<8x128xf32>
    %370 = arith.mulf %369, %363 : vector<8x128xf32>
    %371 = arith.addf %347, %370 : vector<8x128xf32>
    %c46 = arith.constant 46 : index
    %372 = memref.load %arg3[%c46] : memref<48xf32, #tpu.memory_space<smem>>
    %373 = vector.broadcast %372 : f32 to vector<8x128xf32>
    %374 = arith.mulf %373, %363 : vector<8x128xf32>
    %375 = arith.addf %351, %374 : vector<8x128xf32>
    %c15 = arith.constant 15 : index
    %376 = memref.load %arg1[%c15] : memref<32xf32, #tpu.memory_space<smem>>
    %377 = vector.broadcast %376 : f32 to vector<8x128xf32>
    %378 = arith.mulf %377, %1 : vector<8x128xf32>
    %c31 = arith.constant 31 : index
    %379 = memref.load %arg1[%c31] : memref<32xf32, #tpu.memory_space<smem>>
    %380 = vector.broadcast %379 : f32 to vector<8x128xf32>
    %381 = arith.mulf %380, %3 : vector<8x128xf32>
    %382 = arith.addf %378, %381 : vector<8x128xf32>
    %c15_71 = arith.constant 15 : index
    %383 = memref.load %arg2[%c15_71] : memref<16xf32, #tpu.memory_space<smem>>
    %384 = vector.broadcast %383 : f32 to vector<8x128xf32>
    %385 = arith.addf %382, %384 : vector<8x128xf32>
    %cst_72 = arith.constant 0.000000e+00 : f32
    %386 = vector.broadcast %cst_72 : f32 to vector<8x128xf32>
    %387 = arith.maximumf %385, %386 : vector<8x128xf32>
    %c15_73 = arith.constant 15 : index
    %388 = memref.load %arg3[%c15_73] : memref<48xf32, #tpu.memory_space<smem>>
    %389 = vector.broadcast %388 : f32 to vector<8x128xf32>
    %390 = arith.mulf %389, %387 : vector<8x128xf32>
    %391 = arith.addf %367, %390 : vector<8x128xf32>
    %c31_74 = arith.constant 31 : index
    %392 = memref.load %arg3[%c31_74] : memref<48xf32, #tpu.memory_space<smem>>
    %393 = vector.broadcast %392 : f32 to vector<8x128xf32>
    %394 = arith.mulf %393, %387 : vector<8x128xf32>
    %395 = arith.addf %371, %394 : vector<8x128xf32>
    %c47 = arith.constant 47 : index
    %396 = memref.load %arg3[%c47] : memref<48xf32, #tpu.memory_space<smem>>
    %397 = vector.broadcast %396 : f32 to vector<8x128xf32>
    %398 = arith.mulf %397, %387 : vector<8x128xf32>
    %399 = arith.addf %375, %398 : vector<8x128xf32>
    %400 = arith.maximumf %391, %395 : vector<8x128xf32>
    %401 = arith.maximumf %400, %399 : vector<8x128xf32>
    %402 = arith.subf %391, %401 : vector<8x128xf32>
    %403 = math.exp %402 : vector<8x128xf32>
    %404 = arith.subf %395, %401 : vector<8x128xf32>
    %405 = math.exp %404 : vector<8x128xf32>
    %406 = arith.subf %399, %401 : vector<8x128xf32>
    %407 = math.exp %406 : vector<8x128xf32>
    %408 = arith.addf %403, %405 : vector<8x128xf32>
    %409 = arith.addf %408, %407 : vector<8x128xf32>
    %410 = tpu.reciprocal %409 : vector<8x128xf32> -> vector<8x128xf32>
    %411 = arith.mulf %403, %410 : vector<8x128xf32>
    %c0_75 = arith.constant 0 : index
    %c0_76 = arith.constant 0 : index
    %c0_77 = arith.constant 0 : index
    %412 = vector.load %arg6[%c0_75, %c0_76, %c0_77] : memref<3x8x128xf32, #tpu.memory_space<vmem>>, vector<1x8x128xf32>
    %413 = vector.shape_cast %412 : vector<1x8x128xf32> to vector<8x128xf32>
    %414 = vector.shape_cast %411 : vector<8x128xf32> to vector<1x8x128xf32>
    tpu.vector_store %arg6[%c0_75, %c0_76, %c0_77], %414 {strides = array<i32>} : memref<3x8x128xf32, #tpu.memory_space<vmem>>, vector<1x8x128xf32>,
    %415 = arith.mulf %405, %410 : vector<8x128xf32>
    %c1_78 = arith.constant 1 : index
    %c0_79 = arith.constant 0 : index
    %c0_80 = arith.constant 0 : index
    %416 = vector.load %arg6[%c1_78, %c0_79, %c0_80] : memref<3x8x128xf32, #tpu.memory_space<vmem>>, vector<1x8x128xf32>
    %417 = vector.shape_cast %416 : vector<1x8x128xf32> to vector<8x128xf32>
    %418 = vector.shape_cast %415 : vector<8x128xf32> to vector<1x8x128xf32>
    tpu.vector_store %arg6[%c1_78, %c0_79, %c0_80], %418 {strides = array<i32>} : memref<3x8x128xf32, #tpu.memory_space<vmem>>, vector<1x8x128xf32>,
    %419 = arith.mulf %407, %410 : vector<8x128xf32>
    %c2_81 = arith.constant 2 : index
    %c0_82 = arith.constant 0 : index
    %c0_83 = arith.constant 0 : index
    %420 = vector.load %arg6[%c2_81, %c0_82, %c0_83] : memref<3x8x128xf32, #tpu.memory_space<vmem>>, vector<1x8x128xf32>
    %421 = vector.shape_cast %420 : vector<1x8x128xf32> to vector<8x128xf32>
    %422 = vector.shape_cast %419 : vector<8x128xf32> to vector<1x8x128xf32>
    tpu.vector_store %arg6[%c2_81, %c0_82, %c0_83], %422 {strides = array<i32>} : memref<3x8x128xf32, #tpu.memory_space<vmem>>, vector<1x8x128xf32>,
    return
  }
  func.func @transform_0(%arg0: i32) -> i32 {
    %c0_i32 = arith.constant 0 : i32
    %c0_i32_0 = arith.constant 0 : i32
    return %c0_i32 : i32
  }
  func.func @transform_1(%arg0: i32) -> i32 {
    %c0_i32 = arith.constant 0 : i32
    %c0_i32_0 = arith.constant 0 : i32
    return %c0_i32 : i32
  }
  func.func @transform_2(%arg0: i32) -> i32 {
    %c0_i32 = arith.constant 0 : i32
    %c0_i32_0 = arith.constant 0 : i32
    return %c0_i32 : i32
  }
  func.func @transform_3(%arg0: i32) -> i32 {
    %c0_i32 = arith.constant 0 : i32
    %c0_i32_0 = arith.constant 0 : i32
    return %c0_i32 : i32
  }
  func.func @transform_4(%arg0: i32) -> (i32, i32, i32) {
    %c0_i32 = arith.constant 0 : i32
    %c0_i32_0 = arith.constant 0 : i32
    %c0_i32_1 = arith.constant 0 : i32
    return %c0_i32, %arg0, %c0_i32_0 : i32, i32, i32
  }
  func.func @transform_5(%arg0: i32) -> (i32, i32, i32) {
    %c0_i32 = arith.constant 0 : i32
    %c0_i32_0 = arith.constant 0 : i32
    %c0_i32_1 = arith.constant 0 : i32
    return %c0_i32, %arg0, %c0_i32_0 : i32, i32, i32
  }
}

</mosaic_0001>

<bundles_post_ra>
// kernel: tpu_custom_call.1
= control target key start
LH: loop header
LB: loop body
LE: loop exit
PB: predicated region body
PF: predicated region fallthrough
CT: control target
= control target key end

     0   :  { %10 = vsyncpa [#allocation5], 0  ;;  %s1124_s0 = inlined_call_operand.hbm [shape: f32[32], index: 0, kind: input, shape index: {}]   ;;  %s1125_s1 = inlined_call_operand.vmem [shape: f32[16], index: 1, kind: input, shape index: {}]   ;;  %s1126_s2 = inlined_call_operand.vmem [shape: f32[48], index: 2, kind: input, shape index: {}]   ;;  %s1127_s3 = inlined_call_operand.vmem [shape: f32[3], index: 3, kind: input, shape index: {}]   ;;  %s1128_s4 = inlined_call_operand.hbm [shape: f32[2,8,128], index: 4, kind: input, shape index: {}]   ;;  %s1129_s5 = inlined_call_operand.hbm [shape: f32[3,8,128], index: 5, kind: output, shape index: {}]  }
   0x1   :  { %11 = vsyncpa [#allocation6], 0 }
   0x2   :  { %12 = vsyncpa [#allocation9], 0 }
   0x3   :  { %13 = vsyncpa [#allocation3], 0  ;;  %s39_s20 = sshll.u32 %s1126_s2, 4  ;;  %s40_s20 = int_to_ptr.vmem [resolvable:$true] %s39_s20 }
   0x4   :  { %14 = vsyncpa [#allocation4], 0  ;;  %s614_s21 = scalar_lea.vmem %s40_s20, 16  ;;  %p619_p1 = scmp.lt.s32.totalorder %s40_s20, %s40_s20 }
   0x5   :  { %p615_p0 = scmp.ne.s32.totalorder %s40_s20, %s614_s21  ;;  %p620_p2 = scmp.lt.s32.totalorder %s614_s21, %s614_s21 }
   0x7   :  { %p621_p3 = por %p620_p2, %p619_p1 }
   0x9   :  { %p622_p4 = pnand %p621_p3, %p615_p0 }
   0xb   :  { %625 = shalt.err (!%p622_p4)
}
   0xc   :  { %s714_s22 = smov [#allocation8]   ;;  %s626_s25 = scalar_lea.hbm %s1124_s0, 16 }
   0xd   :  { %42 = dma.vmem_to_smem %s40_s20, 16, %s714_s22, [#allocation9]  }
   0xe   :  { %p627_p5 = scmp.ne.s32.totalorder %s1124_s0, %s626_s25  ;;  %p630_p6 = scmp.lt.u32.totalorder %s626_s25, %s1124_s0 }
  0x10   :  { %p632_p7 = pnand %p630_p6, %p627_p5 }
  0x12   :  { %635 = shalt.err (!%p632_p7)
}
  0x13   :  { %s715_s29 = smov [#allocation2]   ;;  %s29_s9 = sshll.u32 %s1125_s1, 4  ;;  %s30_s9 = int_to_ptr.vmem [resolvable:$true] %s29_s9 }
  0x14   :  { %22 = dma.hbm_to_smem %s1124_s0, 16, %s715_s29, [#allocation5]  }
  0x15   :  { %s49_s12 = sshll.u32 %s1127_s3, 4  ;;  %s636_s13 = scalar_lea.vmem %s30_s9, 16  ;;  %s50_s12 = int_to_ptr.vmem [resolvable:$true] %s49_s12 }
  0x16   :  { %p637_p8 = scmp.ne.s32.totalorder %s30_s9, %s636_s13  ;;  %p641_p9 = scmp.lt.s32.totalorder %s30_s9, %s30_s9 }
  0x17   :  { %p642_p10 = scmp.lt.s32.totalorder %s636_s13, %s636_s13 }
  0x19   :  { %p643_p11 = por %p642_p10, %p641_p9 }
  0x1b   :  { %p644_p12 = pnand %p643_p11, %p637_p8 }
  0x1d   :  { %647 = shalt.err (!%p644_p12)
}
  0x1e   :  { %s716_s14 = smov [#allocation7]   ;;  %s648_s0 = scalar_lea.vmem %s50_s12, 16 }
  0x1f   :  { %32 = dma.vmem_to_smem %s30_s9, 16, %s716_s14, [#allocation6]  }
  0x20   :  { %p649_p13 = scmp.ne.s32.totalorder %s50_s12, %s648_s0  ;;  %p653_p0 = scmp.lt.s32.totalorder %s50_s12, %s50_s12 }
  0x21   :  { %p654_p1 = scmp.lt.s32.totalorder %s648_s0, %s648_s0 }
  0x23   :  { %p655_p2 = por %p654_p1, %p653_p0 }
  0x25   :  { %p656_p3 = pnand %p655_p2, %p649_p13 }
  0x27   :  { %659 = shalt.err (!%p656_p3)
}
  0x28   :  { %s717_s1 = smov [#allocation10]   ;;  %s718_s3 = smov [#allocation11]  }
  0x29   :  { %52 = dma.vmem_to_smem %s50_s12, 16, %s717_s1, [#allocation9]  }
  0x2a   :  { %s58_s15 = sshll.u32 %s718_s3, 4  ;;  %s660_s18 = scalar_lea.hbm %s1128_s4, 256  ;;  %s59_s15 = int_to_ptr.vmem [resolvable:$true] %s58_s15 }
  0x2b   :  { %p661_p4 = scmp.ne.s32.totalorder %s1128_s4, %s660_s18  ;;  %p664_p5 = scmp.lt.u32.totalorder %s660_s18, %s1128_s4 }
  0x2d   :  { %p666_p6 = pnand %p664_p5, %p661_p4 }
  0x2f   :  { %669 = shalt.err (!%p666_p6)
}
  0x30   :  { %s670_s23 = scalar_lea.vmem %s59_s15, 256  ;;  %p675_p8 = scmp.lt.s32.totalorder %s59_s15, %s59_s15 }
  0x31   :  { %p671_p7 = scmp.ne.s32.totalorder %s59_s15, %s670_s23  ;;  %p676_p9 = scmp.lt.s32.totalorder %s670_s23, %s670_s23 }
  0x33   :  { %p677_p10 = por %p676_p9, %p675_p8 }
  0x35   :  { %p678_p11 = pnand %p677_p10, %p671_p7 }
  0x37   :  { %681 = shalt.err (!%p678_p11)
}
  0x38   :  { %s719_s24 = smov 128   ;;  %s720_s25 = smov 8  }
  0x39   :  { %64 = dma.hbm_to_vmem [thread:$0]  %s1128_s4, 256, %s59_s15, [#allocation3], %s719_s24, %s719_s24, %s720_s25  }
  0x3a   :  { %704 = dma.done.wait [#allocation5], 16  }
  0x3b   :  { %705 = vsyncadd [#allocation5], 4294967280 }
  0x3c   :  { %706 = dma.done.wait [#allocation6], 16  }
  0x3d   :  { %707 = vsyncadd [#allocation6], 4294967280 }
  0x3e   :  { %708 = dma.done.wait [#allocation9], 32  }
  0x3f   :  { %709 = vsyncadd [#allocation9], 4294967264 }
  0x40   :  { %710 = dma.done.wait [#allocation3], 256  }
  0x41   :  { %711 = vsyncadd [#allocation3], 4294967040 }
  0x42   :  { %80 = sfence }
  0x43   :  { %s788_s2 = sld [smem:[#allocation10]]  ;;  %s790_s28 = sld [smem:[#allocation10 + $0x1]]  ;;  %v802_v0 = vld [vmem:[#allocation11] sm:$0xff]  ;;  %v806_v1 = vld [vmem:[#allocation11 + $0x8] sm:$0xff] }
  0x44   :  { %s792_s29 = sld [smem:[#allocation10 + $0x2]]  ;;  %s93_s30 = sld [smem:[#allocation2]] }
  0x45   :  { %s505_s6 = sld [smem:[#allocation2 + $0x10]]  ;;  %s508_s10 = sld [smem:[#allocation2 + $0x1]] }
  0x46   :  { %s794_s7 = sld [smem:[#allocation7]]  ;;  %s509_s11 = sld [smem:[#allocation2 + $0x11]] }
  0x47   :  { %s796_s4 = sld [smem:[#allocation8]]  ;;  %s804_s12 = sld [smem:[#allocation7 + $0x1]] }
  0x48   :  { %s798_s8 = sld [smem:[#allocation8 + $0x10]]  ;;  %s808_s13 = sld [smem:[#allocation8 + $0x1]] }
  0x49   :  { %s800_s9 = sld [smem:[#allocation8 + $0x20]]  ;;  %s810_s14 = sld [smem:[#allocation8 + $0x11]]  ;;  %v85_v6 = vstv %s788_s2  ;;  %v88_v7 = vstv %s790_s28 }
  0x4a   :  { %v94_v2 = vstv %s93_s30  ;;  %s812_s0 = sld [smem:[#allocation8 + $0x21]]  ;;  %s814_s1 = sld [smem:[#allocation2 + $0x2]]  ;;  %v91_v10 = vstv %s792_s29 }
  0x4b   :  { %v95_v3 = vmul.f32 %v94_v2, %v802_v0  ;;  %v97_v4 = vstv %s505_s6  ;;  %s817_s3 = sld [smem:[#allocation2 + $0x12]]  ;;  %v117_v9 = vstv %s508_s10  ;;  %s831_s19 = sld [smem:[#allocation2 + $0x3]] }
  0x4c   :  { %s819_s15 = sld [smem:[#allocation7 + $0x2]]  ;;  %v98_v5 = vmul.f32 %v97_v4, %v806_v1  ;;  %v101_v8 = vstv %s794_s7  ;;  %v118_v12 = vmul.f32 %v117_v9, %v802_v0  ;;  %v120_v13 = vstv %s509_s11  ;;  %s835_s20 = sld [smem:[#allocation2 + $0x13]] }
  0x4d   :  { %s822_s16 = sld [smem:[#allocation8 + $0x2]]  ;;  %v105_v14 = vstv %s796_s4  ;;  %v121_v17 = vmul.f32 %v120_v13, %v806_v1  ;;  %s841_s21 = sld [smem:[#allocation7 + $0x3]]  ;;  %v124_v19 = vstv %s804_s12 }
  0x4e   :  { %s824_s17 = sld [smem:[#allocation8 + $0x12]]  ;;  %v99_v11 = vadd.f32 %v98_v5, %v95_v3  ;;  %v109_v15 = vstv %s798_s8  ;;  %v128_v20 = vstv %s808_s13  ;;  %s846_s22 = sld [smem:[#allocation8 + $0x3]] }
  0x4f   :  { %s829_s18 = sld [smem:[#allocation8 + $0x22]]  ;;  %v113_v16 = vstv %s800_s9  ;;  %s848_s23 = sld [smem:[#allocation8 + $0x13]]  ;;  %v122_v22 = vadd.f32 %v121_v17, %v118_v12  ;;  %v132_v23 = vstv %s810_s14 }
  0x50   :  { %v102_v18 = vadd.f32 %v101_v8, %v99_v11  ;;  %v140_v21 = vstv %s814_s1  ;;  %v136_v27 = vstv %s812_s0  ;;  %s856_s26 = sld [smem:[#allocation2 + $0x4]]  ;;  %s861_s27 = sld [smem:[#allocation8 + $0x23]] }
  0x51   :  { %v141_v24 = vmul.f32 %v140_v21, %v802_v0  ;;  %v143_v25 = vstv %s817_s3  ;;  %v125_v30 = vadd.f32 %v124_v19, %v122_v22  ;;  %v163_v33 = vstv %s831_s19  ;;  %s863_s2 = sld [smem:[#allocation2 + $0x14]]  ;;  %s876_s7 = sld [smem:[#allocation2 + $0x5]] }
  0x52   :  { %v103_v26 = vmax.f32 %v102_v18, 0.0  ;;  %v144_v28 = vmul.f32 %v143_v25, %v806_v1  ;;  %v147_v29 = vstv %s819_s15  ;;  %s865_s28 = sld [smem:[#allocation7 + $0x4]]  ;;  %v164_v40 = vmul.f32 %v163_v33, %v802_v0  ;;  %s878_s4 = sld [smem:[#allocation2 + $0x15]] }
  0x53   :  { %v151_v31 = vstv %s822_s16  ;;  %s867_s29 = sld [smem:[#allocation8 + $0x4]]  ;;  %v126_v38 = vmax.f32 %v125_v30, 0.0  ;;  %v166_v41 = vstv %s835_s20  ;;  %v170_v51 = vstv %s841_s21  ;;  %s884_s8 = sld [smem:[#allocation7 + $0x5]] }
  0x54   :  { %v155_v32 = vstv %s824_s17  ;;  %v106_v34 = vmul.f32 %v105_v14, %v103_v26  ;;  %v110_v35 = vmul.f32 %v109_v15, %v103_v26  ;;  %v114_v36 = vmul.f32 %v113_v16, %v103_v26  ;;  %s872_s30 = sld [smem:[#allocation8 + $0x14]]  ;;  %s886_s9 = sld [smem:[#allocation8 + $0x5]] }
  0x55   :  { %v145_v37 = vadd.f32 %v144_v28, %v141_v24  ;;  %v159_v39 = vstv %s829_s18  ;;  %s874_s6 = sld [smem:[#allocation8 + $0x24]]  ;;  %v129_v46 = vmul.f32 %v128_v20, %v126_v38  ;;  %v133_v47 = vmul.f32 %v132_v23, %v126_v38  ;;  %s888_s10 = sld [smem:[#allocation8 + $0x15]] }
  0x56   :  { %v107_v42 = vadd.f32 %v106_v34, %v85_v6  ;;  %v111_v43 = vadd.f32 %v110_v35, %v88_v7  ;;  %v115_v44 = vadd.f32 %v114_v36, %v91_v10  ;;  %v137_v48 = vmul.f32 %v136_v27, %v126_v38  ;;  %s891_s11 = sld [smem:[#allocation2 + $0x6]]  ;;  %s898_s13 = sld [smem:[#allocation8 + $0x25]] }
  0x57   :  { %v148_v45 = vadd.f32 %v147_v29, %v145_v37  ;;  %v167_v49 = vmul.f32 %v166_v41, %v806_v1  ;;  %v174_v52 = vstv %s846_s22  ;;  %v178_v53 = vstv %s848_s23  ;;  %s893_s12 = sld [smem:[#allocation2 + $0x16]]  ;;  %s910_s3 = sld [smem:[#allocation2 + $0x7]] }
  0x58   :  { %v130_v54 = vadd.f32 %v129_v46, %v107_v42  ;;  %v134_v55 = vadd.f32 %v133_v47, %v111_v43  ;;  %v138_v56 = vadd.f32 %v137_v48, %v115_v44  ;;  %v186_v61 = vstv %s856_s26  ;;  %s900_s14 = sld [smem:[#allocation7 + $0x6]]  ;;  %s918_s16 = sld [smem:[#allocation2 + $0x17]] }
  0x59   :  { %v149_v50 = vmax.f32 %v148_v45, 0.0  ;;  %v168_v57 = vadd.f32 %v167_v49, %v164_v40  ;;  %v182_v63 = vstv %s861_s27  ;;  %v187_v2 = vmul.f32 %v186_v61, %v802_v0  ;;  %s904_s0 = sld [smem:[#allocation8 + $0x6]]  ;;  %s923_s17 = sld [smem:[#allocation7 + $0x7]] }
  0x5a   :  { %v189_v3 = vstv %s863_s2  ;;  %v193_v7 = vstv %s865_s28  ;;  %v197_v10 = vstv %s867_s29  ;;  %v201_v11 = vstv %s872_s30  ;;  %s908_s1 = sld [smem:[#allocation8 + $0x16]]  ;;  %s926_s18 = sld [smem:[#allocation8 + $0x7]] }
  0x5b   :  { %v152_v58 = vmul.f32 %v151_v31, %v149_v50  ;;  %v156_v59 = vmul.f32 %v155_v32, %v149_v50  ;;  %v160_v60 = vmul.f32 %v159_v39, %v149_v50  ;;  %v171_v62 = vadd.f32 %v170_v51, %v168_v57  ;;  %s916_s15 = sld [smem:[#allocation8 + $0x26]]  ;;  %s928_s19 = sld [smem:[#allocation8 + $0x17]] }
  0x5c   :  { %v190_v6 = vmul.f32 %v189_v3, %v806_v1  ;;  %v205_v13 = vstv %s874_s6  ;;  %v209_v14 = vstv %s876_s7  ;;  %v212_v15 = vstv %s878_s4  ;;  %s936_s20 = sld [smem:[#allocation2 + $0x8]]  ;;  %s938_s21 = sld [smem:[#allocation8 + $0x27]] }
  0x5d   :  { %v153_v4 = vadd.f32 %v152_v58, %v130_v54  ;;  %v157_v5 = vadd.f32 %v156_v59, %v134_v55  ;;  %v161_v8 = vadd.f32 %v160_v60, %v138_v56  ;;  %v172_v9 = vmax.f32 %v171_v62, 0.0  ;;  %s940_s22 = sld [smem:[#allocation2 + $0x18]]  ;;  %s956_s28 = sld [smem:[#allocation2 + $0x9]] }
  0x5e   :  { %v191_v12 = vadd.f32 %v190_v6, %v187_v2  ;;  %v210_v19 = vmul.f32 %v209_v14, %v802_v0  ;;  %v213_v21 = vmul.f32 %v212_v15, %v806_v1  ;;  %v216_v22 = vstv %s884_s8  ;;  %s945_s23 = sld [smem:[#allocation7 + $0x8]]  ;;  %s958_s29 = sld [smem:[#allocation2 + $0x19]] }
  0x5f   :  { %v175_v16 = vmul.f32 %v174_v52, %v172_v9  ;;  %v179_v17 = vmul.f32 %v178_v53, %v172_v9  ;;  %v183_v18 = vmul.f32 %v182_v63, %v172_v9  ;;  %v220_v23 = vstv %s886_s9  ;;  %s947_s26 = sld [smem:[#allocation8 + $0x8]]  ;;  %s964_s30 = sld [smem:[#allocation7 + $0x9]] }
  0x60   :  { %v194_v20 = vadd.f32 %v193_v7, %v191_v12  ;;  %v224_v27 = vstv %s888_s10  ;;  %v214_v29 = vadd.f32 %v213_v21, %v210_v19  ;;  %v232_v30 = vstv %s891_s11  ;;  %s949_s27 = sld [smem:[#allocation8 + $0x18]]  ;;  %s966_s6 = sld [smem:[#allocation8 + $0x9]] }
  0x61   :  { %v176_v24 = vadd.f32 %v175_v16, %v153_v4  ;;  %v180_v25 = vadd.f32 %v179_v17, %v157_v5  ;;  %v184_v26 = vadd.f32 %v183_v18, %v161_v8  ;;  %v235_v31 = vstv %s893_s12  ;;  %s951_s2 = sld [smem:[#allocation8 + $0x28]]  ;;  %s968_s7 = sld [smem:[#allocation8 + $0x19]] }
  0x62   :  { %v195_v28 = vmax.f32 %v194_v20, 0.0  ;;  %v228_v32 = vstv %s898_s13  ;;  %v233_v33 = vmul.f32 %v232_v30, %v802_v0  ;;  %v236_v34 = vmul.f32 %v235_v31, %v806_v1  ;;  %s971_s4 = sld [smem:[#allocation2 + $0xa]]  ;;  %s978_s9 = sld [smem:[#allocation8 + $0x29]] }
  0x63   :  { %v239_v35 = vstv %s900_s14  ;;  %v217_v39 = vadd.f32 %v216_v22, %v214_v29  ;;  %v243_v41 = vstv %s904_s0  ;;  %v247_v42 = vstv %s908_s1  ;;  %s973_s8 = sld [smem:[#allocation2 + $0x1a]]  ;;  %s990_s13 = sld [smem:[#allocation2 + $0xb]] }
  0x64   :  { %v198_v36 = vmul.f32 %v197_v10, %v195_v28  ;;  %v202_v37 = vmul.f32 %v201_v11, %v195_v28  ;;  %v206_v38 = vmul.f32 %v205_v13, %v195_v28  ;;  %v237_v40 = vadd.f32 %v236_v34, %v233_v33  ;;  %s980_s10 = sld [smem:[#allocation7 + $0xa]]  ;;  %s998_s0 = sld [smem:[#allocation2 + $0x1b]] }
  0x65   :  { %v255_v43 = vstv %s910_s3  ;;  %v218_v47 = vmax.f32 %v217_v39, 0.0  ;;  %v251_v49 = vstv %s916_s15  ;;  %v258_v51 = vstv %s918_s16  ;;  %s984_s11 = sld [smem:[#allocation8 + $0xa]]  ;;  %s1003_s1 = sld [smem:[#allocation7 + $0xb]] }
  0x66   :  { %v199_v44 = vadd.f32 %v198_v36, %v176_v24  ;;  %v203_v45 = vadd.f32 %v202_v37, %v180_v25  ;;  %v207_v46 = vadd.f32 %v206_v38, %v184_v26  ;;  %v240_v48 = vadd.f32 %v239_v35, %v237_v40  ;;  %s988_s12 = sld [smem:[#allocation8 + $0x1a]]  ;;  %s1006_s3 = sld [smem:[#allocation8 + $0xb]] }
  0x67   :  { %v256_v50 = vmul.f32 %v255_v43, %v802_v0  ;;  %v221_v52 = vmul.f32 %v220_v23, %v218_v47  ;;  %v225_v53 = vmul.f32 %v224_v27, %v218_v47  ;;  %v229_v54 = vmul.f32 %v228_v32, %v218_v47  ;;  %s996_s14 = sld [smem:[#allocation8 + $0x2a]]  ;;  %s1008_s15 = sld [smem:[#allocation8 + $0x1b]] }
  0x68   :  { %v259_v55 = vmul.f32 %v258_v51, %v806_v1  ;;  %v241_v56 = vmax.f32 %v240_v48, 0.0  ;;  %v262_v57 = vstv %s923_s17  ;;  %v266_v58 = vstv %s926_s18  ;;  %s1016_s16 = sld [smem:[#allocation2 + $0xc]]  ;;  %s1018_s17 = sld [smem:[#allocation8 + $0x2b]] }
  0x69   :  { %v270_v59 = vstv %s928_s19  ;;  %v222_v60 = vadd.f32 %v221_v52, %v199_v44  ;;  %v226_v61 = vadd.f32 %v225_v53, %v203_v45  ;;  %v230_v62 = vadd.f32 %v229_v54, %v207_v46  ;;  %s1020_s18 = sld [smem:[#allocation2 + $0x1c]] }
  0x6a   :  { %v260_v63 = vadd.f32 %v259_v55, %v256_v50  ;;  %v244_v2 = vmul.f32 %v243_v41, %v241_v56  ;;  %v248_v3 = vmul.f32 %v247_v42, %v241_v56  ;;  %v252_v4 = vmul.f32 %v251_v49, %v241_v56  ;;  %s1025_s19 = sld [smem:[#allocation7 + $0xc]] }
  0x6b   :  { %v278_v5 = vstv %s936_s20  ;;  %v274_v7 = vstv %s938_s21  ;;  %v281_v9 = vstv %s940_s22  ;;  %v285_v13 = vstv %s945_s23  ;;  %s1027_s20 = sld [smem:[#allocation8 + $0xc]]  ;;  %s1036_s23 = sld [smem:[#allocation2 + $0xd]] }
  0x6c   :  { %v263_v6 = vadd.f32 %v262_v57, %v260_v63  ;;  %v279_v8 = vmul.f32 %v278_v5, %v802_v0  ;;  %v245_v10 = vadd.f32 %v244_v2, %v222_v60  ;;  %v249_v11 = vadd.f32 %v248_v3, %v226_v61  ;;  %s1029_s21 = sld [smem:[#allocation8 + $0x1c]] }
  0x6d   :  { %v282_v12 = vmul.f32 %v281_v9, %v806_v1  ;;  %v253_v14 = vadd.f32 %v252_v4, %v230_v62  ;;  %v289_v16 = vstv %s947_s26  ;;  %v293_v17 = vstv %s949_s27  ;;  %s1031_s22 = sld [smem:[#allocation8 + $0x2c]]  ;;  %s1038_s26 = sld [smem:[#allocation2 + $0x1d]] }
  0x6e   :  { %v264_v15 = vmax.f32 %v263_v6, 0.0  ;;  %v297_v19 = vstv %s951_s2  ;;  %v301_v20 = vstv %s956_s28  ;;  %v304_v21 = vstv %s958_s29  ;;  %s1044_s27 = sld [smem:[#allocation7 + $0xd]]  ;;  %s1051_s29 = sld [smem:[#allocation2 + $0xe]] }
  0x6f   :  { %v283_v18 = vadd.f32 %v282_v12, %v279_v8  ;;  %v302_v25 = vmul.f32 %v301_v20, %v802_v0  ;;  %v305_v27 = vmul.f32 %v304_v21, %v806_v1  ;;  %v308_v28 = vstv %s964_s30  ;;  %s1046_s2 = sld [smem:[#allocation8 + $0xd]]  ;;  %s1053_s30 = sld [smem:[#allocation2 + $0x1e]] }
  0x70   :  { %v267_v22 = vmul.f32 %v266_v58, %v264_v15  ;;  %v271_v23 = vmul.f32 %v270_v59, %v264_v15  ;;  %v275_v24 = vmul.f32 %v274_v7, %v264_v15  ;;  %v312_v29 = vstv %s966_s6  ;;  %s1048_s28 = sld [smem:[#allocation8 + $0x1d]] }
  0x71   :  { %v286_v26 = vadd.f32 %v285_v13, %v283_v18  ;;  %v316_v33 = vstv %s968_s7  ;;  %v306_v35 = vadd.f32 %v305_v27, %v302_v25  ;;  %v324_v36 = vstv %s971_s4  ;;  %s1058_s6 = sld [smem:[#allocation8 + $0x2d]]  ;;  %s1060_s7 = sld [smem:[#allocation7 + $0xe]] }
  0x72   :  { %v268_v30 = vadd.f32 %v267_v22, %v245_v10  ;;  %v272_v31 = vadd.f32 %v271_v23, %v249_v11  ;;  %v276_v32 = vadd.f32 %v275_v24, %v253_v14  ;;  %v327_v37 = vstv %s973_s8  ;;  %s1064_s4 = sld [smem:[#allocation8 + $0xe]] }
  0x73   :  { %v287_v34 = vmax.f32 %v286_v26, 0.0  ;;  %v320_v38 = vstv %s978_s9  ;;  %v325_v39 = vmul.f32 %v324_v36, %v802_v0  ;;  %v328_v40 = vmul.f32 %v327_v37, %v806_v1  ;;  %s1068_s8 = sld [smem:[#allocation8 + $0x1e]]  ;;  %s1070_s9 = sld [smem:[#allocation2 + $0xf]] }
  0x74   :  { %v331_v41 = vstv %s980_s10  ;;  %v309_v45 = vadd.f32 %v308_v28, %v306_v35  ;;  %v335_v47 = vstv %s984_s11  ;;  %v339_v48 = vstv %s988_s12  ;;  %s1076_s10 = sld [smem:[#allocation8 + $0x2e]]  ;;  %s1078_s11 = sld [smem:[#allocation2 + $0x1f]] }
  0x75   :  { %v290_v42 = vmul.f32 %v289_v16, %v287_v34  ;;  %v294_v43 = vmul.f32 %v293_v17, %v287_v34  ;;  %v298_v44 = vmul.f32 %v297_v19, %v287_v34  ;;  %v329_v46 = vadd.f32 %v328_v40, %v325_v39  ;;  %s1084_s12 = sld [smem:[#allocation7 + $0xf]] }
  0x76   :  { %v347_v49 = vstv %s990_s13  ;;  %v310_v53 = vmax.f32 %v309_v45, 0.0  ;;  %v343_v55 = vstv %s996_s14  ;;  %v350_v57 = vstv %s998_s0  ;;  %s1092_s13 = sld [smem:[#allocation8 + $0xf]] }
  0x77   :  { %v291_v50 = vadd.f32 %v290_v42, %v268_v30  ;;  %v295_v51 = vadd.f32 %v294_v43, %v272_v31  ;;  %v299_v52 = vadd.f32 %v298_v44, %v276_v32  ;;  %v332_v54 = vadd.f32 %v331_v41, %v329_v46  ;;  %s1097_s14 = sld [smem:[#allocation8 + $0x1f]] }
  0x78   :  { %v348_v56 = vmul.f32 %v347_v49, %v802_v0  ;;  %v313_v58 = vmul.f32 %v312_v29, %v310_v53  ;;  %v317_v59 = vmul.f32 %v316_v33, %v310_v53  ;;  %v321_v60 = vmul.f32 %v320_v38, %v310_v53  ;;  %s1099_s0 = sld [smem:[#allocation8 + $0x2f]] }
  0x79   :  { %v351_v61 = vmul.f32 %v350_v57, %v806_v1  ;;  %v333_v62 = vmax.f32 %v332_v54, 0.0  ;;  %v354_v63 = vstv %s1003_s1  ;;  %v358_v2 = vstv %s1006_s3  ;;  %s721_s1 = smov [#allocation12]  }
  0x7a   :  { %v362_v3 = vstv %s1008_s15  ;;  %v314_v4 = vadd.f32 %v313_v58, %v291_v50  ;;  %v318_v5 = vadd.f32 %v317_v59, %v295_v51  ;;  %v322_v6 = vadd.f32 %v321_v60, %v299_v52  ;;  %s488_s3 = sshll.u32 %s721_s1, 4  ;;  %s489_s3 = int_to_ptr.vmem [resolvable:$true] %s488_s3 }
  0x7b   :  { %v352_v7 = vadd.f32 %v351_v61, %v348_v56  ;;  %v336_v8 = vmul.f32 %v335_v47, %v333_v62  ;;  %v340_v9 = vmul.f32 %v339_v48, %v333_v62  ;;  %v344_v10 = vmul.f32 %v343_v55, %v333_v62  ;;  %s682_s15 = scalar_lea.vmem %s489_s3, 384  ;;  %p687_p13 = scmp.lt.s32.totalorder %s489_s3, %s489_s3 }
  0x7c   :  { %v370_v11 = vstv %s1016_s16  ;;  %v366_v13 = vstv %s1018_s17  ;;  %v373_v15 = vstv %s1020_s18  ;;  %v377_v19 = vstv %s1025_s19  ;;  %p683_p12 = scmp.ne.s32.totalorder %s489_s3, %s682_s15  ;;  %p688_p0 = scmp.lt.s32.totalorder %s682_s15, %s682_s15 }
  0x7d   :  { %v355_v12 = vadd.f32 %v354_v63, %v352_v7  ;;  %v371_v14 = vmul.f32 %v370_v11, %v802_v0  ;;  %v337_v16 = vadd.f32 %v336_v8, %v314_v4  ;;  %v341_v17 = vadd.f32 %v340_v9, %v318_v5 }
  0x7e   :  { %v374_v18 = vmul.f32 %v373_v15, %v806_v1  ;;  %v345_v20 = vadd.f32 %v344_v10, %v322_v6  ;;  %v381_v22 = vstv %s1027_s20  ;;  %v385_v23 = vstv %s1029_s21  ;;  %p689_p1 = por %p688_p0, %p687_p13 }
  0x7f   :  { %v356_v21 = vmax.f32 %v355_v12, 0.0  ;;  %v389_v25 = vstv %s1031_s22  ;;  %v393_v26 = vstv %s1036_s23  ;;  %v396_v27 = vstv %s1038_s26 }
  0x80   :  { %v375_v24 = vadd.f32 %v374_v18, %v371_v14  ;;  %v394_v31 = vmul.f32 %v393_v26, %v802_v0  ;;  %v397_v33 = vmul.f32 %v396_v27, %v806_v1  ;;  %v400_v34 = vstv %s1044_s27  ;;  %p690_p2 = pnand %p689_p1, %p683_p12 }
  0x81   :  { %v359_v28 = vmul.f32 %v358_v2, %v356_v21  ;;  %v363_v29 = vmul.f32 %v362_v3, %v356_v21  ;;  %v367_v30 = vmul.f32 %v366_v13, %v356_v21  ;;  %v404_v35 = vstv %s1046_s2 }
  0x82   :  { %v378_v32 = vadd.f32 %v377_v19, %v375_v24  ;;  %v408_v39 = vstv %s1048_s28  ;;  %v398_v41 = vadd.f32 %v397_v33, %v394_v31  ;;  %v416_v42 = vstv %s1051_s29 }
  0x83   :  { %v360_v36 = vadd.f32 %v359_v28, %v337_v16  ;;  %v364_v37 = vadd.f32 %v363_v29, %v341_v17  ;;  %v368_v38 = vadd.f32 %v367_v30, %v345_v20  ;;  %v419_v43 = vstv %s1053_s30 }
  0x84   :  { %v379_v40 = vmax.f32 %v378_v32, 0.0  ;;  %v412_v44 = vstv %s1058_s6  ;;  %v417_v45 = vmul.f32 %v416_v42, %v802_v0  ;;  %v420_v46 = vmul.f32 %v419_v43, %v806_v1 }
  0x85   :  { %v423_v47 = vstv %s1060_s7  ;;  %v401_v51 = vadd.f32 %v400_v34, %v398_v41  ;;  %v427_v53 = vstv %s1064_s4  ;;  %v431_v54 = vstv %s1068_s8 }
  0x86   :  { %v382_v48 = vmul.f32 %v381_v22, %v379_v40  ;;  %v386_v49 = vmul.f32 %v385_v23, %v379_v40  ;;  %v390_v50 = vmul.f32 %v389_v25, %v379_v40  ;;  %v421_v52 = vadd.f32 %v420_v46, %v417_v45 }
  0x87   :  { %v439_v55 = vstv %s1070_s9  ;;  %v402_v59 = vmax.f32 %v401_v51, 0.0  ;;  %v435_v61 = vstv %s1076_s10  ;;  %v442_v63 = vstv %s1078_s11 }
  0x88   :  { %v383_v56 = vadd.f32 %v382_v48, %v360_v36  ;;  %v387_v57 = vadd.f32 %v386_v49, %v364_v37  ;;  %v391_v58 = vadd.f32 %v390_v50, %v368_v38  ;;  %v424_v60 = vadd.f32 %v423_v47, %v421_v52 }
  0x89   :  { %v440_v62 = vmul.f32 %v439_v55, %v802_v0  ;;  %v405_v2 = vmul.f32 %v404_v35, %v402_v59  ;;  %v409_v3 = vmul.f32 %v408_v39, %v402_v59  ;;  %v413_v4 = vmul.f32 %v412_v44, %v402_v59 }
  0x8a   :  { %v443_v5 = vmul.f32 %v442_v63, %v806_v1  ;;  %v425_v6 = vmax.f32 %v424_v60, 0.0  ;;  %v446_v7 = vstv %s1084_s12  ;;  %v450_v0 = vstv %s1092_s13 }
  0x8b   :  { %v406_v8 = vadd.f32 %v405_v2, %v383_v56  ;;  %v410_v9 = vadd.f32 %v409_v3, %v387_v57  ;;  %v414_v10 = vadd.f32 %v413_v4, %v391_v58  ;;  %v454_v16 = vstv %s1097_s14 }
  0x8c   :  { %v444_v11 = vadd.f32 %v443_v5, %v440_v62  ;;  %v428_v12 = vmul.f32 %v427_v53, %v425_v6  ;;  %v432_v13 = vmul.f32 %v431_v54, %v425_v6  ;;  %v436_v14 = vmul.f32 %v435_v61, %v425_v6 }
  0x8d   :  { %v458_v17 = vstv %s1099_s0 }
  0x8e   :  { %v447_v15 = vadd.f32 %v446_v7, %v444_v11  ;;  %v429_v18 = vadd.f32 %v428_v12, %v406_v8  ;;  %v433_v19 = vadd.f32 %v432_v13, %v410_v9  ;;  %v437_v20 = vadd.f32 %v436_v14, %v414_v10 }
  0x90   :  { %v448_v21 = vmax.f32 %v447_v15, 0.0 }
  0x92   :  { %v451_v22 = vmul.f32 %v450_v0, %v448_v21  ;;  %v455_v23 = vmul.f32 %v454_v16, %v448_v21  ;;  %v459_v1 = vmul.f32 %v458_v17, %v448_v21 }
  0x94   :  { %v452_v24 = vadd.f32 %v451_v22, %v429_v18  ;;  %v456_v25 = vadd.f32 %v455_v23, %v433_v19  ;;  %v460_v26 = vadd.f32 %v459_v1, %v437_v20 }
  0x96   :  { %v461_v27 = vmax.f32 %v452_v24, %v456_v25 }
  0x98   :  { %v462_v28 = vmax.f32 %v461_v27, %v460_v26 }
  0x9a   :  { %v463_v29 = vsub.f32 %v452_v24, %v462_v28  ;;  %v466_v30 = vsub.f32 %v456_v25, %v462_v28  ;;  %v469_v31 = vsub.f32 %v460_v26, %v462_v28 }
  0x9c   :  { %v464_v32 = vmul.f32 1.442695, %v463_v29  ;;  %v467_v33 = vmul.f32 1.442695, %v466_v30  ;;  %v470_v34 = vmul.f32 1.442695, %v469_v31 }
  0x9e   :  { %606 = vpow2.f32 %v464_v32 }
  0x9f   :  { %608 = vpow2.f32 %v467_v33 }
  0xa0   :  { %610 = vpow2.f32 %v470_v34 }
  0xa8   :  { %v607_v35 = vpop.eup %606 }
  0xa9   :  { %v609_v36 = vpop.eup %608 }
  0xaa   :  { %v611_v37 = vpop.eup %610  ;;  %v472_v38 = vadd.f32 %v609_v36, %v607_v35 }
  0xac   :  { %v473_v39 = vadd.f32 %v611_v37, %v472_v38 }
  0xae   :  { %612 = vrcp.f32 %v473_v39 }
  0xb8   :  { %v613_v40 = vpop.eup %612 }
  0xb9   :  { %v475_v41 = vmul.f32 %v613_v40, %v607_v35  ;;  %v477_v42 = vmul.f32 %v613_v40, %v609_v36  ;;  %v480_v43 = vmul.f32 %v613_v40, %v611_v37 }
  0xbb   :  { %476 = vst [vmem:[#allocation12] sm:$0xff] %v475_v41  ;;  %479 = vst [vmem:[#allocation12 + $0x8] sm:$0xff] %v477_v42 }
  0xbc   :  { %482 = vst [vmem:[#allocation12 + $0x10] sm:$0xff] %v480_v43 }
  0xbd   :  { %693 = shalt.err (!%p690_p2)
}
  0xbe   :  { %s694_s18 = scalar_lea.hbm %s1129_s5, 384 }
  0xbf   :  { %p695_p3 = scmp.ne.s32.totalorder %s1129_s5, %s694_s18  ;;  %p698_p4 = scmp.lt.u32.totalorder %s694_s18, %s1129_s5 }
  0xc1   :  { %p700_p5 = pnand %p698_p4, %p695_p3 }
  0xc3   :  { %703 = shalt.err (!%p700_p5)
}
  0xc4   :  { %494 = dma.vmem_to_hbm [thread:$0]  %s489_s3, 384, %s1129_s5, [#allocation4], %s719_s24, %s719_s24, %s720_s25  }
  0xc5   :  { %712 = dma.done.wait [#allocation4], 384  }
  0xc6   :  { %713 = vsyncadd [#allocation4], 4294966912 }
  0xc7   :  { %498 = vsyncpa [#allocation3], 1 }
  0xc8   :  { %499 = vsyncpa [#allocation4], 1 }
  0xc9   :  { %500 = vsyncpa [#allocation5], 1 }
  0xca   :  { %501 = vsyncpa [#allocation6], 1 }
  0xcb   :  { %502 = vsyncpa [#allocation9], 1 }

</bundles_post_ra>
